<compile_context>
chip_gen: v7x
topology: tpu7x:2x2x1
jax: 0.10.0
libtpu: 0.0.40
codegen_flags: <defaults>
</compile_context>

<pallas_src>
import functools

import numpy as np
import jax
import jax.numpy as jnp
from jax.experimental import pallas as pl
from jax.experimental.pallas import tpu as pltpu


def _adaptive_concat_pool_kernel(x_ref, mask_t_ref, inv_cnt_ref, o_ref, *, bins):
    """One block of TB batch elements per grid step.

    x_ref      : (TB, C, L)    input block
    mask_t_ref : (L, l)        0/1 bin-membership mask, pre-transposed (shared)
    inv_cnt_ref: (1, l)        float32 1 / bin_size (shared)
    o_ref      : (TB, 2, C, l) output block; [:, 0] = max pool, [:, 1] = avg pool
    bins       : static tuple of (start, end) per adaptive bin
    """
    TB, C, L = x_ref.shape
    l = o_ref.shape[-1]
    x = x_ref[...]  # (TB, C, L)

    # ---- adaptive max pool: static per-bin slice reductions (VPU/XLU).
    # No (C, l, L) intermediate ever materializes.
    mx = jnp.stack([jnp.max(x[:, :, s:e], axis=-1) for s, e in bins], axis=-1)  # (TB, C, l)

    # ---- adaptive avg pool: one MXU matmul over the flattened block,
    # then a precomputed reciprocal scale (f32 accumulate, no divide).
    x2d = x.reshape(TB * C, L)
    sums = jnp.dot(x2d, mask_t_ref[...],
                   preferred_element_type=jnp.float32)          # (TB*C, l) f32
    avg = (sums * inv_cnt_ref[...]).reshape(TB, C, l)            # (TB, C, l) f32

    # Two aligned full-tile stores on a clean major axis (no sublane-offset split).
    o_ref[:, 0:1, :, :] = mx[:, None, :, :].astype(o_ref.dtype)
    o_ref[:, 1:2, :, :] = avg[:, None, :, :].astype(o_ref.dtype)


def _pick_block_batch(N, C, L, itemsize, target_bytes=4 << 20):
    """Largest divisor of N whose x-block stays <= target_bytes while keeping
    at least 2 grid steps (so both TensorCores on v7x get work) when N >= 2."""
    best = 1
    for tb in range(1, N + 1):
        if N % tb:
            continue
        if tb * C * L * itemsize > target_bytes:
            break  # block size grows monotonically with tb
        if N >= 2 and (N // tb) < 2:
            continue
        best = tb
    return best


def adaptive_concat_pool1d(x, l):
    """x: (N, C, L) -> (N, 2*C, l), matching PyTorch adaptive-pool semantics."""
    N, C, L = x.shape

    # PyTorch adaptive bins: [floor(i*L/l), ceil((i+1)*L/l))
    bins = tuple((int((i * L) // l), int(-((-(i + 1) * L) // l))) for i in range(l))

    # (L, l) 0/1 membership mask (pre-transposed -> natural [K, N] MXU layout).
    mask_np = np.zeros((L, l), dtype=np.float32)
    for i, (s, e) in enumerate(bins):
        mask_np[s:e, i] = 1.0
    inv_cnt_np = (1.0 / mask_np.sum(axis=0)).reshape(1, l).astype(np.float32)

    mask_t = jnp.asarray(mask_np, dtype=x.dtype)   # 0/1 is exact in bf16 too
    inv_cnt = jnp.asarray(inv_cnt_np)              # keep float32 for precision

    tb = _pick_block_batch(N, C, L, jnp.dtype(x.dtype).itemsize)
    grid = (N // tb,)

    kernel = functools.partial(_adaptive_concat_pool_kernel, bins=bins)

    out = pl.pallas_call(
        kernel,
        out_shape=jax.ShapeDtypeStruct((N, 2, C, l), x.dtype),
        grid=grid,
        in_specs=[
            pl.BlockSpec((tb, C, L), lambda n: (n, 0, 0)),   # batch block
            pl.BlockSpec((L, l), lambda n: (0, 0)),          # shared mask
            pl.BlockSpec((1, l), lambda n: (0, 0)),          # shared 1/counts
        ],
        out_specs=pl.BlockSpec((tb, 2, C, l), lambda n: (n, 0, 0, 0)),
        compiler_params=pltpu.CompilerParams(
            dimension_semantics=("parallel",),
            vmem_limit_bytes=32 * 1024 * 1024,   # safe on v5e/v6e (128 MiB) and v7x (64 MiB)
        ),
    )(x, mask_t, inv_cnt)

    # (N, 2, C, l) -> (N, 2*C, l): contiguous reshape (free); equals
    # torch.cat([maxpool, avgpool], dim=1).
    return out.reshape(N, 2 * C, l)


def _reference(x, l):
    """Pure-JAX reference with identical PyTorch adaptive-pool semantics."""
    N, C, L = x.shape
    mx_bins, av_bins = [], []
    for i in range(l):
        s = (i * L) // l
        e = -((-(i + 1) * L) // l)
        seg = x[:, :, s:e]
        mx_bins.append(seg.max(axis=-1))
        av_bins.append(seg.mean(axis=-1))
    mx = jnp.stack(mx_bins, axis=-1)
    av = jnp.stack(av_bins, axis=-1)
    return jnp.concatenate([mx, av], axis=1)


if __name__ == "__main__":
    key = jax.random.PRNGKey(0)
    N, C, L = 2, 4, 16   # batch, channels, input length
    l = 6                # adaptive output length (non-divisor -> ragged bins)

    x = jax.random.normal(key, (N, C, L), dtype=jnp.float32)

    out = adaptive_concat_pool1d(x, l)
    out = jax.block_until_ready(out)

    ref = _reference(x, l)
    assert out.shape == (N, 2 * C, l), out.shape
    np.testing.assert_allclose(np.asarray(out), np.asarray(ref),
                               rtol=1e-5, atol=1e-5)
    print("KERNEL_OK")
</pallas_src>

<mosaic_0001>
module attributes {stable_mosaic.version = 11 : i64} {
  func.func @_adaptive_concat_pool_kernel(%arg0: i32, %arg1: memref<1x4x16xf32, #tpu.memory_space<vmem>>, %arg2: memref<16x6xf32, #tpu.memory_space<vmem>>, %arg3: memref<1x6xf32, #tpu.memory_space<vmem>>, %arg4: memref<1x2x4x6xf32, #tpu.memory_space<vmem>>) attributes {dimension_semantics = [#tpu.dimension_semantics<parallel>], iteration_bounds = array<i64: 2>, scalar_prefetch = 0 : i64, scratch_operands = 0 : i64, tpu.core_type = #tpu.core_type<tc>, window_params = [{transform_indices = @transform_0, window_bounds = array<i64: 1, 4, 16>}, {pipeline_mode = #tpu.pipeline_mode<synchronous>, transform_indices = @transform_1, window_bounds = array<i64: 16, 6>}, {pipeline_mode = #tpu.pipeline_mode<synchronous>, transform_indices = @transform_2, window_bounds = array<i64: 1, 6>}, {transform_indices = @transform_3, window_bounds = array<i64: 1, 2, 4, 6>}]} {
    %c0 = arith.constant 0 : index
    %c0_0 = arith.constant 0 : index
    %c0_1 = arith.constant 0 : index
    %0 = vector.load %arg1[%c0, %c0_0, %c0_1] : memref<1x4x16xf32, #tpu.memory_space<vmem>>, vector<1x4x16xf32>
    %1 = vector.extract_strided_slice %0 {offsets = [0, 0, 0], sizes = [1, 4, 3], strides = [1, 1, 1]} : vector<1x4x16xf32> to vector<1x4x3xf32>
    %cst = arith.constant dense<0xFF800000> : vector<1x4xf32>
    %2 = vector.multi_reduction <maximumf>, %1, %cst [2] : vector<1x4x3xf32> to vector<1x4xf32>
    %3 = vector.extract_strided_slice %0 {offsets = [0, 0, 2], sizes = [1, 4, 4], strides = [1, 1, 1]} : vector<1x4x16xf32> to vector<1x4x4xf32>
    %cst_2 = arith.constant dense<0xFF800000> : vector<1x4xf32>
    %4 = vector.multi_reduction <maximumf>, %3, %cst_2 [2] : vector<1x4x4xf32> to vector<1x4xf32>
    %5 = vector.extract_strided_slice %0 {offsets = [0, 0, 5], sizes = [1, 4, 3], strides = [1, 1, 1]} : vector<1x4x16xf32> to vector<1x4x3xf32>
    %cst_3 = arith.constant dense<0xFF800000> : vector<1x4xf32>
    %6 = vector.multi_reduction <maximumf>, %5, %cst_3 [2] : vector<1x4x3xf32> to vector<1x4xf32>
    %7 = vector.extract_strided_slice %0 {offsets = [0, 0, 8], sizes = [1, 4, 3], strides = [1, 1, 1]} : vector<1x4x16xf32> to vector<1x4x3xf32>
    %cst_4 = arith.constant dense<0xFF800000> : vector<1x4xf32>
    %8 = vector.multi_reduction <maximumf>, %7, %cst_4 [2] : vector<1x4x3xf32> to vector<1x4xf32>
    %9 = vector.extract_strided_slice %0 {offsets = [0, 0, 10], sizes = [1, 4, 4], strides = [1, 1, 1]} : vector<1x4x16xf32> to vector<1x4x4xf32>
    %cst_5 = arith.constant dense<0xFF800000> : vector<1x4xf32>
    %10 = vector.multi_reduction <maximumf>, %9, %cst_5 [2] : vector<1x4x4xf32> to vector<1x4xf32>
    %11 = vector.extract_strided_slice %0 {offsets = [0, 0, 13], sizes = [1, 4, 3], strides = [1, 1, 1]} : vector<1x4x16xf32> to vector<1x4x3xf32>
    %cst_6 = arith.constant dense<0xFF800000> : vector<1x4xf32>
    %12 = vector.multi_reduction <maximumf>, %11, %cst_6 [2] : vector<1x4x3xf32> to vector<1x4xf32>
    %13 = vector.shape_cast %2 : vector<1x4xf32> to vector<1x4x1xf32>
    %14 = vector.shape_cast %4 : vector<1x4xf32> to vector<1x4x1xf32>
    %15 = vector.shape_cast %6 : vector<1x4xf32> to vector<1x4x1xf32>
    %16 = vector.shape_cast %8 : vector<1x4xf32> to vector<1x4x1xf32>
    %17 = vector.shape_cast %10 : vector<1x4xf32> to vector<1x4x1xf32>
    %18 = vector.shape_cast %12 : vector<1x4xf32> to vector<1x4x1xf32>
    %19 = tpu.concatenate %13, %14, %15, %16, %17, %18 in 2 : vector<1x4x1xf32>, vector<1x4x1xf32>, vector<1x4x1xf32>, vector<1x4x1xf32>, vector<1x4x1xf32>, vector<1x4x1xf32> -> vector<1x4x6xf32>
    %20 = vector.shape_cast %0 : vector<1x4x16xf32> to vector<4x16xf32>
    %c0_7 = arith.constant 0 : index
    %c0_8 = arith.constant 0 : index
    %21 = vector.load %arg2[%c0_7, %c0_8] : memref<16x6xf32, #tpu.memory_space<vmem>>, vector<16x6xf32>
    %cst_9 = arith.constant dense<0.000000e+00> : vector<4x6xf32>
    %22 = tpu.matmul %20, %21, %cst_9 {dimension_numbers = #tpu.dot_dimension_numbers<[1], [0], [0], [1], [0, 0, 1, 1], [], []>} : vector<4x16xf32>, vector<16x6xf32>, vector<4x6xf32> -> vector<4x6xf32>
    %c0_10 = arith.constant 0 : index
    %c0_11 = arith.constant 0 : index
    %23 = vector.load %arg3[%c0_10, %c0_11] : memref<1x6xf32, #tpu.memory_space<vmem>>, vector<1x6xf32>
    %24 = vector.broadcast %23 : vector<1x6xf32> to vector<4x6xf32>
    %25 = arith.mulf %22, %24 : vector<4x6xf32>
    %26 = vector.shape_cast %25 : vector<4x6xf32> to vector<1x4x6xf32>
    %27 = vector.shape_cast %19 : vector<1x4x6xf32> to vector<1x1x4x6xf32>
    %c0_12 = arith.constant 0 : index
    %c0_13 = arith.constant 0 : index
    %c0_14 = arith.constant 0 : index
    %c0_15 = arith.constant 0 : index
    %28 = vector.load %arg4[%c0_12, %c0_13, %c0_14, %c0_15] : memref<1x2x4x6xf32, #tpu.memory_space<vmem>>, vector<1x1x4x6xf32>
    tpu.vector_store %arg4[%c0_12, %c0_13, %c0_14, %c0_15], %27 {strides = array<i32>} : memref<1x2x4x6xf32, #tpu.memory_space<vmem>>, vector<1x1x4x6xf32>,
    %29 = vector.shape_cast %26 : vector<1x4x6xf32> to vector<1x1x4x6xf32>
    %c0_16 = arith.constant 0 : index
    %c1 = arith.constant 1 : index
    %c0_17 = arith.constant 0 : index
    %c0_18 = arith.constant 0 : index
    %30 = vector.load %arg4[%c0_16, %c1, %c0_17, %c0_18] : memref<1x2x4x6xf32, #tpu.memory_space<vmem>>, vector<1x1x4x6xf32>
    tpu.vector_store %arg4[%c0_16, %c1, %c0_17, %c0_18], %29 {strides = array<i32>} : memref<1x2x4x6xf32, #tpu.memory_space<vmem>>, vector<1x1x4x6xf32>,
    return
  }
  func.func @transform_0(%arg0: i32) -> (i32, i32, i32) {
    %c0_i32 = arith.constant 0 : i32
    %c0_i32_0 = arith.constant 0 : i32
    %c0_i32_1 = arith.constant 0 : i32
    return %arg0, %c0_i32, %c0_i32_0 : i32, i32, i32
  }
  func.func @transform_1(%arg0: i32) -> (i32, i32) {
    %c0_i32 = arith.constant 0 : i32
    %c0_i32_0 = arith.constant 0 : i32
    %c0_i32_1 = arith.constant 0 : i32
    return %c0_i32, %c0_i32_0 : i32, i32
  }
  func.func @transform_2(%arg0: i32) -> (i32, i32) {
    %c0_i32 = arith.constant 0 : i32
    %c0_i32_0 = arith.constant 0 : i32
    %c0_i32_1 = arith.constant 0 : i32
    return %c0_i32, %c0_i32_0 : i32, i32
  }
  func.func @transform_3(%arg0: i32) -> (i32, i32, i32, i32) {
    %c0_i32 = arith.constant 0 : i32
    %c0_i32_0 = arith.constant 0 : i32
    %c0_i32_1 = arith.constant 0 : i32
    %c0_i32_2 = arith.constant 0 : i32
    return %arg0, %c0_i32, %c0_i32_0, %c0_i32_1 : i32, i32, i32, i32
  }
}

</mosaic_0001>

<bundles_post_ra>
// kernel: tpu_custom_call.1
= control target key start
LH: loop header
LB: loop body
LE: loop exit
PB: predicated region body
PF: predicated region fallthrough
CT: control target
= control target key end

     0   :  { %8 = vsyncpa [#allocation3], 0  ;;  %s639_s0 = inlined_call_operand.vmem [shape: f32[2,4,16], index: 0, kind: input, shape index: {}]   ;;  %s640_s1 = inlined_call_operand.vmem [shape: f32[16,6], index: 1, kind: input, shape index: {}]   ;;  %s641_s2 = inlined_call_operand.vmem [shape: f32[1,6], index: 2, kind: input, shape index: {}]   ;;  %s642_s3 = inlined_call_operand.hbm [shape: f32[2,2,4,6], index: 3, kind: output, shape index: {}]  }
   0x1   :  { %10 = vsyncpa [#allocation3 + $0x1], 0  ;;  %s527_s12 = smov 0   ;;  %s529_s13 = smov 0  }
   0x2   :  { %s531_s14 = smov 0   ;;  %s533_s15 = smov 0  }
   0x3 LB: > { %s548_s16 = sadd.s32 4294967295, %s499_s15   ;;  %s365_s17 = sadd.s32 4294967294, %s499_s15   ;;  %s499_s15 = sphi %s533_s15, %s648_s15   ;;  %s495_s14 = sphi %s531_s14, %s647_s14   ;;  %s491_s13 = sphi %s529_s13, %s646_s13   ;;  %s487_s12 = sphi %s527_s12, %s645_s12  }
   0x4   : > { %s552_s18 = sadd.s32 1, %s499_s15   ;;  %s91_s19 = sadd.s32 1, %s495_s14 }
   0x5   : > { %s88_s20 = ssub.s32 %s499_s15, %s552_s18  ;;  %p101_p0 = scmp.ne.s32.totalorder %s495_s14, %s491_s13 }
   0x6   : > { %p89_p1 = scmp.eq.s32.totalorder %s88_s20, 0  ;;  %p102_p2 = scmp.eq.s32.totalorder %s548_s16, 1 }
   0x7   : > { %p107_p3 = scmp.ne.s32.totalorder %s491_s13, %s487_s12  ;;  %p108_p4 = scmp.eq.s32.totalorder %s365_s17, 1 }
   0x8   : > { %s563_s21 = scalar_select %p89_p1, %s495_s14, %s91_s19  }
   0x9   : > { %p565_p5 = por %p102_p2, %p101_p0  ;;  %p569_p6 = por %p108_p4, %p107_p3 }
   0xa   : > { %p368_p7 = scmp.ge.s32.totalorder %s499_s15, 1  ;;  %p139_p8 = scmp.lt.s32.totalorder %s499_s15, 3 }
   0xc   : > { %p140_p9 = pnand %p368_p7, %p139_p8 }
   0xd   : > { %v201_v0 = vld [vmem:[%s640_s1] sm:$0xff] (!%p140_p9)  ;;  %v202_v1 = vld [vmem:[%s640_s1 + $0x8] sm:$0xff] (!%p140_p9)  ;;  %p162_p10 = scmp.lt.s32.totalorder (!%p140_p9), %s548_s16, 1  ;;  %v501_v2 = vmov (!%p140_p9), 0.0|0.0   ;;  %vm502_vm0 = vmmov (!%p140_p9), 0   ;;  %v503_v4 = vmov (!%p140_p9), 0.0  }
   0xe   : > { %143 = sbr.rel (%p140_p9) target bundleno = 255 (0xff), region = 32  ;;  %390 = vmatprep.subr.bf16.mxu0 (!%p140_p9), %v501_v2  ;;  %v391_v3 = vpack.c.bf16 (!%p140_p9), %v202_v1, %v201_v0  ;;  %387 = vmatprep.mubr.msk.f32.mxu0 (!%p140_p9), %vm502_vm0, %v503_v4  ;;  %vm203_vm1 = vcmask (!%p140_p9), 130048   ;;  %vm167_vm2 = vcmask (!%p140_p9), 19456   ;;  %vm175_vm3 = vcmask (!%p140_p9), 60456   ;;  %s159_s6 = sand.u32 (!%p140_p9), 1, %s491_s13  }
   0xf   : > { %vm171_vm4 = vcmask (!%p140_p9), 44048   ;;  %vm179_vm5 = vcmask (!%p140_p9), 85056   ;;  %vm183_vm6 = vcmask (!%p140_p9), 109648   ;;  %vm187_vm7 = vcmask (!%p140_p9), 126056   ;;  %s369_s7 = sshll.u32 (!%p140_p9), %s159_s6, 3  ;;  %s379_s10 = sshll.u32 (!%p140_p9), %s548_s16, 7 }
  0x10   : > { %392 = vmatpush3.bf16.msra.mxu0 (!%p140_p9), %v391_v3  ;;  %vm191_vm8 = vcmask (!%p140_p9), 7168   ;;  %vm193_vm9 = vcmask (!%p140_p9), 15360   ;;  %vm195_vm10 = vcmask (!%p140_p9), 23552   ;;  %vm197_vm11 = vcmask (!%p140_p9), 31744   ;;  %s161_s8 = scalar_lea.vmem (!%p140_p9), [#allocation2], %s369_s7  ;;  %s596_s24 = scalar_lea.hbm (!%p140_p9), %s642_s3, %s379_s10 }
  0x11   : > { %vm199_vm12 = vcmask (!%p140_p9), 39936   ;;  %vm285_vm13 = vcmask (!%p140_p9), 44032   ;;  %s303_s9 = sshll.u32 (!%p140_p9), %s161_s8, 4  ;;  %v372_v23 = vld [vmem:[%s641_s2] ss:$0 sm:$0xff] (!%p140_p9)  ;;  %s598_s25 = scalar_lea.sflag (!%p140_p9), [#allocation3], %s159_s6  ;;  %s591_s9 = int_to_ptr.vmem [resolvable:$true] %s303_s9 }
  0x12   : > { %s504_s26 = smov (!%p140_p9), [#allocation2]  }
  0x13   : > { %s441_s27 = sshll.u32 (!%p140_p9), %s504_s26, 4  ;;  %s442_s27 = int_to_ptr.vmem [resolvable:$false] %s441_s27 }
  0x14   : > { %p444_p0 = scmp.lt.s32.totalorder (!%p140_p9), %s591_s9, %s442_s27 }
  0x15   : > { %s163_s28 = scalar_select %p162_p10, %s548_s16, 1 }
  0x16   : > { %s437_s16 = scalar_lea.vmem %s591_s9, 128 }
  0x17   : > { %s370_s29 = sshll.u32 %s163_s28, 2  ;;  %p438_p11 = scmp.ne.s32.totalorder %s591_s9, %s437_s16 }
  0x18   : > { %s165_s5 = scalar_lea.vmem %s639_s0, %s370_s29  ;;  %s443_s28 = scalar_lea.vmem %s442_s27, 256 }
  0x19   : > { %v166_v5 = vld [vmem:[%s165_s5] sm:$0xf]  ;;  %p439_p12 = pnand %p438_p11, %p565_p5  ;;  %p445_p1 = scmp.lt.s32.totalorder %s443_s28, %s437_s16 }
  0x1a   : > { %388 = vmatmul.mubr.msk.f32.vlgmr.msra.gmra.mrb[0].mxu0 %vm203_vm1, %v166_v5  ;;  %v168_v6 = vsel %vm167_vm2, %v166_v5, -inf  ;;  %v176_v7 = vsel %vm175_vm3, %v166_v5, -inf  ;;  %v172_v8 = vsel %vm171_vm4, %v166_v5, -inf  ;;  %v180_v9 = vsel %vm179_vm5, %v166_v5, -inf }
  0x1b   : > { %169 = vmax.xlane.f32.xlu0 %v168_v6  ;;  %177 = vmax.xlane.f32.xlu1 %v176_v7  ;;  %v184_v10 = vsel %vm183_vm6, %v166_v5, -inf  ;;  %v188_v11 = vsel %vm187_vm7, %v166_v5, -inf  ;;  %p440_p13 = pneg %p439_p12  ;;  %p446_p2 = por %p445_p1, %p444_p0 }
  0x1d   : > { %p447_p3 = pnand %p446_p2, %p440_p13 }
  0x1f   : > { %173 = vmax.xlane.f32.xlu0 %v172_v8  ;;  %181 = vmax.xlane.f32.xlu1 %v180_v9 }
  0x23   : > { %185 = vmax.xlane.f32.xlu0 %v184_v10  ;;  %189 = vmax.xlane.f32.xlu1 %v188_v11 }
  0xa8   : > { %v170_v12 = vpop.xlane.xlu0 %169  ;;  %v178_v13 = vpop.xlane.xlu1 %177 }
  0xac   : > { %v174_v14 = vpop.xlane.xlu0 %173  ;;  %v182_v15 = vpop.xlane.xlu1 %181 }
  0xad   : > { %v192_v16 = vsel %vm191_vm8, %v170_v12, %v174_v14 }
  0xae   : > { %v194_v17 = vsel %vm193_vm9, %v192_v16, %v178_v13 }
  0xaf   : > { %v196_v18 = vsel %vm195_vm10, %v194_v17, %v182_v15 }
  0xb0   : > { %v186_v19 = vpop.xlane.xlu0 %185  ;;  %v190_v20 = vpop.xlane.xlu1 %189 }
  0xb1   : > { %v198_v21 = vsel %vm197_vm11, %v196_v18, %v186_v19 }
  0xb2   : > { %v200_v22 = vsel %vm199_vm12, %v198_v21, %v190_v20 }
  0xb3   : > { %286 = vst.msk [vmem:[%s161_s8] sm:$0xf] %vm285_vm13, %v200_v22 }
  0xed   : > { %v273_v24 = vpop.f32.mrb[0].mxu0 }
  0xee   : > { %v284_v25 = vmul.f32 %v372_v23, %v273_v24  ;;  %v389_v26 = vpop.f32.mrb[1].mxu0 }
  0xf0   : > { %373 = vst.msk [vmem:[%s161_s8 + $0x4] sm:$0xf] %vm285_vm13, %v284_v25 }
  0xf1   : > { %450 = shalt.err (!%p447_p3)
}
  0xf2   : > { %s451_s29 = scalar_lea.hbm %s596_s24, 128  ;;  %s455_s5 = scalar_lea.hbm %s642_s3, 256 }
  0xf3   : > { %p452_p4 = scmp.ne.s32.totalorder %s596_s24, %s451_s29  ;;  %p456_p9 = scmp.lt.u32.totalorder %s596_s24, %s642_s3 }
  0xf4   : > { %p457_p10 = scmp.lt.u32.totalorder %s455_s5, %s451_s29  ;;  %p459_p12 = scmp.lt.u32.totalorder %s451_s29, %s596_s24 }
  0xf5   : > { %p453_p7 = pnand %p452_p4, %p565_p5 }
  0xf6   : > { %p458_p11 = por %p457_p10, %p456_p9 }
  0xf7   : > { %p454_p8 = pneg %p453_p7 }
  0xf8   : > { %p460_p13 = por %p459_p12, %p458_p11 }
  0xfa   : > { %p461_p0 = pnand %p460_p13, %p454_p8 }
  0xfc   : > { %464 = shalt.err (!%p461_p0)
}
  0xfd   : > { %s505_s8 = smov 64   ;;  %s506_s10 = smov 4  }
  0xfe   : > { %393 = dma.vmem_to_hbm [thread:$0]  (%p565_p5), %s591_s9, 128, %s596_s24, %s598_s25, %s505_s8, %s505_s8, %s506_s10  }
  0xff PF: > { %p399_p1 = scmp.ge.s32.totalorder %s499_s15, 2  ;;  %s318_s11 = sand.u32 1, %s487_s12  }
 0x100   : > { %s319_s17 = scalar_lea.sflag [#allocation3], %s318_s11 }
 0x101   : > { %p396_p2 = pnand %p399_p1, %p569_p6 }
 0x103   : > { %482 = dma.done.wait (!%p396_p2), %s319_s17, 128  }
 0x104   : > { %484 = vsyncadd (!%p396_p2), %s319_s17, 4294967168  ;;  %p13_p3 = scmp.ge.s32.totalorder %s552_s18, 4   ;;  %s645_s12 = smov %s491_s13 }
 0x105   : > { %s646_s13 = smov %s495_s14  ;;  %s647_s14 = smov %s563_s21 }
 0x106   : > { %s648_s15 = smov %s552_s18  ;;  %15 = sbr.rel (!%p13_p3) target bundleno = 3 (0x3), region = 68 }
 0x10d   :  { %324 = vsyncpa [#allocation3], 1 }
 0x10e   :  { %326 = vsyncpa [#allocation3 + $0x1], 1 }

</bundles_post_ra>
